<compile_context>
chip_gen: v6e
topology: v6e:2x2x1
jax: 0.10.0
libtpu: 0.0.40
codegen_flags: <defaults>
</compile_context>

<pallas_src>
import functools

import jax
import jax.numpy as jnp
import numpy as np
from jax import lax
from jax.experimental import pallas as pl
from jax.experimental.pallas import tpu as pltpu


def _round_up(x, m):
    return ((x + m - 1) // m) * m


def _upsample_kernel(x_ref, w_ref, b_ref, cm_ref, vm_ref, o_ref, *,
                     W, HW, ct, mask_stats):
    # x_ref : (1, Cin_p, HWp_in)  bf16 flat NCHW input slab (zero padded so the
    #                             shifted tap loads at +1 / +W / +W+1 stay in
    #                             bounds and last-row shifts read zeros).
    # w_ref : (1, 9*ct, Cin_p)    bf16 packed per-tap weights for this Cout tile
    #                             rows [0,4ct): x00 tap, parities 0..3
    #                             rows [4ct,6ct): x01 tap, parities 1,3
    #                             rows [6ct,8ct): x10 tap, parities 2,3
    #                             rows [8ct,9ct): x11 tap, parity 3
    # b_ref : (1, 4*ct, 1)        f32 bias replicated per parity plane.
    # cm_ref: (1, HW_out)         bf16 last-column mask for the +1-column taps.
    # vm_ref: (1, HW_out)         bf16 valid-lane mask (only used if HW padded).
    # o_ref : (1, 4*ct, HW_out)   f32 parity-major output planes (lane dense).
    HW_out = o_ref.shape[2]
    colmask = cm_ref[...]                               # (1, HW_out) bf16

    # Four shifted taps of the input, each (Cin_p, HW_out), kept in bf16:
    #   x00 = x[h, w], x01 = x[h, w+1], x10 = x[h+1, w], x11 = x[h+1, w+1]
    # Column w == W-1 of the +1-column taps wraps into the next row; the
    # precomputed mask zeros it with one broadcast multiply.
    x00 = x_ref[0, :, pl.ds(0, HW_out)]
    x01 = x_ref[0, :, pl.ds(1, HW_out)] * colmask
    x10 = x_ref[0, :, pl.ds(W, HW_out)]
    x11 = x_ref[0, :, pl.ds(W + 1, HW_out)] * colmask

    # Per-tap MXU matmuls (bf16 x bf16 -> f32); only the 9 non-zero Cout x Cin
    # blocks of the transposed-conv kernel are ever multiplied.
    A = jnp.dot(w_ref[0, 0:4 * ct, :], x00, preferred_element_type=jnp.float32)
    B = jnp.dot(w_ref[0, 4 * ct:6 * ct, :], x01, preferred_element_type=jnp.float32)
    C = jnp.dot(w_ref[0, 6 * ct:8 * ct, :], x10, preferred_element_type=jnp.float32)
    D = jnp.dot(w_ref[0, 8 * ct:9 * ct, :], x11, preferred_element_type=jnp.float32)

    # Assemble the 4 parity planes (rows p*ct + c) and add bias.
    y = jnp.concatenate([
        A[0:ct],                                              # parity (0,0)
        A[ct:2 * ct] + B[0:ct],                               # parity (0,1)
        A[2 * ct:3 * ct] + C[0:ct],                           # parity (1,0)
        A[3 * ct:4 * ct] + B[ct:2 * ct] + C[ct:2 * ct] + D,   # parity (1,1)
    ], axis=0) + b_ref[0]                                     # (4*ct, HW_out) f32

    # LeakyReLU (PyTorch default negative_slope = 0.01).
    y = jnp.where(y >= 0, y, jnp.float32(0.01) * y)

    # One-pass InstanceNorm statistics over the full 2H x 2W extent
    # (= union of the 4 parity planes), per (n, channel), in f32.
    ys = y * vm_ref[...] if mask_stats else y
    s1 = jnp.sum(ys, axis=1, keepdims=True)                   # (4*ct, 1)
    s2 = jnp.sum(ys * ys, axis=1, keepdims=True)              # (4*ct, 1)
    inv_n = jnp.float32(1.0 / (4 * HW))
    mean = (s1[0:ct] + s1[ct:2 * ct] + s1[2 * ct:3 * ct] + s1[3 * ct:4 * ct]) * inv_n
    ex2 = (s2[0:ct] + s2[ct:2 * ct] + s2[2 * ct:3 * ct] + s2[3 * ct:4 * ct]) * inv_n
    var = jnp.maximum(ex2 - mean * mean, 0.0)
    inv = lax.rsqrt(var + jnp.float32(1e-5))
    mean4 = jnp.concatenate([mean, mean, mean, mean], axis=0)  # (4*ct, 1)
    inv4 = jnp.concatenate([inv, inv, inv, inv], axis=0)       # (4*ct, 1)

    o_ref[0] = ((y - mean4) * inv4).astype(o_ref.dtype)


def upsample_forward(x_nchw, weight, bias):
    """x_nchw: (N, Cin, H, W); weight: (Cin, Cout, 3, 3); bias: (Cout,)."""
    N, Cin, H, W = x_nchw.shape
    Cout = weight.shape[1]
    HW = H * W

    # Padded sizes: bf16 sublane packing needs multiples of 16 on the channel
    # (second-minor) axes; the output lane axis is padded to a multiple of 128
    # so stores are full-width vst (no masked partial stores).
    Cin_p = _round_up(Cin, 16)
    ct = min(64, _round_up(Cout, 16))          # Cout rows per grid tile
    Cout_p = _round_up(Cout, ct)
    n_ct = Cout_p // ct
    HW_out = _round_up(HW, 128)
    HWp_in = _round_up(HW_out + W + 1, 128)

    # Flat bf16 input slab (free reshape of NCHW + one pad; no tap duplication).
    x_flat = jnp.pad(x_nchw.reshape(N, Cin, HW).astype(jnp.bfloat16),
                     ((0, 0), (0, Cin_p - Cin), (0, HWp_in - HW)))

    # Packed per-tap weights. wt[ky, kx] = W(ky,kx)^T with shape (Cout, Cin)
    # for the PyTorch ConvTranspose2d weight layout (Cin, Cout, kh, kw).
    wt = jnp.transpose(weight, (2, 3, 1, 0)).astype(jnp.float32)   # (3,3,Cout,Cin)
    wt = jnp.pad(wt, ((0, 0), (0, 0), (0, Cout_p - Cout), (0, Cin_p - Cin)))

    def blk(ky, kx):
        return wt[ky, kx].reshape(n_ct, ct, Cin_p)

    w00 = jnp.concatenate([blk(1, 1), blk(1, 2), blk(2, 1), blk(2, 2)], axis=1)
    w01 = jnp.concatenate([blk(1, 0), blk(2, 0)], axis=1)
    w10 = jnp.concatenate([blk(0, 1), blk(0, 2)], axis=1)
    w11 = blk(0, 0)
    wpack = jnp.concatenate([w00, w01, w10, w11],
                            axis=1).astype(jnp.bfloat16)           # (n_ct, 9ct, Cin_p)

    b_pad = jnp.pad(bias.astype(jnp.float32), (0, Cout_p - Cout))
    b4 = jnp.broadcast_to(b_pad.reshape(n_ct, 1, ct),
                          (n_ct, 4, ct)).reshape(n_ct, 4 * ct, 1)

    # Precomputed lane masks (bf16 so the tap multiply stays bf16).
    lane = jnp.arange(HW_out, dtype=jnp.int32)
    colmask = (((lane % W) != (W - 1)) & (lane < HW)).astype(jnp.bfloat16).reshape(1, HW_out)
    validmask = (lane < HW).astype(jnp.bfloat16).reshape(1, HW_out)

    # Cost / VMEM sizing.
    flops = 2 * N * n_ct * (9 * ct) * Cin_p * HW_out
    bytes_accessed = (N * Cin_p * HWp_in * 2 + n_ct * 9 * ct * Cin_p * 2
                      + n_ct * 4 * ct * 4 + 2 * 2 * HW_out * 2
                      + N * n_ct * 4 * ct * HW_out * 4)
    vmem_est = (2 * Cin_p * HWp_in * 2            # x (double buffered, bf16)
                + 2 * 9 * ct * Cin_p * 2          # weights
                + 2 * 4 * ct * 128 * 4            # bias (lane-padded)
                + 2 * 2 * 16 * HW_out * 2         # masks (sublane-padded)
                + 2 * 4 * ct * HW_out * 4         # output (double buffered)
                + 4 * Cin_p * HW_out * 2          # shifted taps
                + (9 * ct + 8 * ct) * HW_out * 4)  # A..D, y, temps
    vmem_limit = int(min(max(2 * vmem_est, 32 * 1024 * 1024), 64 * 1024 * 1024))

    out = pl.pallas_call(
        functools.partial(_upsample_kernel, W=W, HW=HW, ct=ct,
                          mask_stats=(HW_out != HW)),
        out_shape=jax.ShapeDtypeStruct((N, n_ct * 4 * ct, HW_out), jnp.float32),
        grid=(N, n_ct),
        in_specs=[
            pl.BlockSpec((1, Cin_p, HWp_in), lambda n, t: (n, 0, 0)),
            pl.BlockSpec((1, 9 * ct, Cin_p), lambda n, t: (t, 0, 0)),
            pl.BlockSpec((1, 4 * ct, 1), lambda n, t: (t, 0, 0)),
            pl.BlockSpec((1, HW_out), lambda n, t: (0, 0)),
            pl.BlockSpec((1, HW_out), lambda n, t: (0, 0)),
        ],
        out_specs=pl.BlockSpec((1, 4 * ct, HW_out), lambda n, t: (n, t, 0)),
        compiler_params=pltpu.CompilerParams(
            dimension_semantics=("parallel", "parallel"),
            vmem_limit_bytes=vmem_limit),
        cost_estimate=pl.CostEstimate(
            flops=flops, transcendentals=N * Cout_p,
            bytes_accessed=bytes_accessed),
    )(x_flat, wpack, b4, colmask, validmask)

    # Parity interleave + NCHW in one transpose.
    #   out[n, t*4ct + (py*2+px)*ct + c, i*W + j] -> y[n, t*ct+c, 2i+py, 2j+px]
    out = out.reshape(N, n_ct, 4, ct, HW_out)
    if HW_out != HW:
        out = out[..., :HW]
    out = out.reshape(N, n_ct, 2, 2, ct, H, W)
    y = jnp.transpose(out, (0, 1, 4, 5, 2, 6, 3)).reshape(N, Cout_p, 2 * H, 2 * W)
    return y[:, :Cout]


def _reference_forward(x_nchw, weight, bias):
    """Pure-JAX reference (transposed conv as lhs-dilated conv).

    Inputs are rounded through bf16 to match the kernel's bf16 MXU operands, so
    the comparison checks the kernel's structure rather than bf16 quantization.
    """
    x_nchw = x_nchw.astype(jnp.bfloat16).astype(jnp.float32)
    weight = weight.astype(jnp.bfloat16).astype(jnp.float32)
    # flip kernel spatially and swap in/out channel axes: (Cout, Cin, 3, 3)
    w_conv = jnp.transpose(weight, (1, 0, 2, 3))[:, :, ::-1, ::-1]
    y = lax.conv_general_dilated(
        x_nchw, w_conv,
        window_strides=(1, 1),
        padding=[(1, 2), (1, 2)],          # (k-1-p, k-1-p+output_padding)
        lhs_dilation=(2, 2),
        dimension_numbers=("NCHW", "OIHW", "NCHW"),
        precision=lax.Precision.HIGHEST,
    ) + bias.reshape(1, -1, 1, 1)
    y = jnp.where(y >= 0, y, 0.01 * y)
    mean = y.mean(axis=(2, 3), keepdims=True)
    var = y.var(axis=(2, 3), keepdims=True)
    return (y - mean) / jnp.sqrt(var + 1e-5)


if __name__ == "__main__":
    N, Cin, Cout, H, W = 2, 4, 8, 16, 16

    key = jax.random.PRNGKey(0)
    kx, kw, kb = jax.random.split(key, 3)
    x = jax.random.normal(kx, (N, Cin, H, W), dtype=jnp.float32)
    # ConvTranspose2d weight layout: (Cin, Cout, 3, 3)
    fan = Cin * 3 * 3
    weight = jax.random.normal(kw, (Cin, Cout, 3, 3), dtype=jnp.float32) / jnp.sqrt(fan)
    bias = jax.random.normal(kb, (Cout,), dtype=jnp.float32) * 0.1

    out = jax.block_until_ready(upsample_forward(x, weight, bias))
    assert out.shape == (N, Cout, 2 * H, 2 * W), out.shape

    ref = jax.block_until_ready(_reference_forward(x, weight, bias))
    np.testing.assert_allclose(np.asarray(out), np.asarray(ref), rtol=5e-3, atol=5e-3)

    print("KERNEL_OK")
</pallas_src>

<mosaic_0001>
module attributes {stable_mosaic.version = 11 : i64} {
  func.func @_upsample_kernel(%arg0: i32, %arg1: i32, %arg2: memref<1x16x384xbf16, #tpu.memory_space<vmem>>, %arg3: memref<1x144x16xbf16, #tpu.memory_space<vmem>>, %arg4: memref<1x64x1xf32, #tpu.memory_space<vmem>>, %arg5: memref<1x256xbf16, #tpu.memory_space<vmem>>, %arg6: memref<1x256xbf16, #tpu.memory_space<vmem>>, %arg7: memref<1x64x256xf32, #tpu.memory_space<vmem>>) attributes {dimension_semantics = [#tpu.dimension_semantics<parallel>, #tpu.dimension_semantics<parallel>], iteration_bounds = array<i64: 2, 1>, scalar_prefetch = 0 : i64, scratch_operands = 0 : i64, tpu.core_type = #tpu.core_type<tc>, window_params = [{transform_indices = @transform_0, window_bounds = array<i64: 1, 16, 384>}, {transform_indices = @transform_1, window_bounds = array<i64: 1, 144, 16>}, {transform_indices = @transform_2, window_bounds = array<i64: 1, 64, 1>}, {pipeline_mode = #tpu.pipeline_mode<synchronous>, transform_indices = @transform_3, window_bounds = array<i64: 1, 256>}, {pipeline_mode = #tpu.pipeline_mode<synchronous>, transform_indices = @transform_4, window_bounds = array<i64: 1, 256>}, {transform_indices = @transform_5, window_bounds = array<i64: 1, 64, 256>}]} {
    %c0 = arith.constant 0 : index
    %c0_0 = arith.constant 0 : index
    %0 = vector.load %arg5[%c0, %c0_0] : memref<1x256xbf16, #tpu.memory_space<vmem>>, vector<1x256xbf16>
    %c0_1 = arith.constant 0 : index
    %c0_2 = arith.constant 0 : index
    %c0_3 = arith.constant 0 : index
    %1 = vector.load %arg2[%c0_1, %c0_2, %c0_3] : memref<1x16x384xbf16, #tpu.memory_space<vmem>>, vector<1x16x256xbf16>
    %2 = vector.shape_cast %1 : vector<1x16x256xbf16> to vector<16x256xbf16>
    %c0_4 = arith.constant 0 : index
    %c0_5 = arith.constant 0 : index
    %c1 = arith.constant 1 : index
    %3 = vector.load %arg2[%c0_4, %c0_5, %c1] : memref<1x16x384xbf16, #tpu.memory_space<vmem>>, vector<1x16x256xbf16>
    %4 = vector.shape_cast %3 : vector<1x16x256xbf16> to vector<16x256xbf16>
    %5 = vector.broadcast %0 : vector<1x256xbf16> to vector<16x256xbf16>
    %6 = arith.mulf %4, %5 : vector<16x256xbf16>
    %c0_6 = arith.constant 0 : index
    %c0_7 = arith.constant 0 : index
    %c16 = arith.constant 16 : index
    %7 = vector.load %arg2[%c0_6, %c0_7, %c16] : memref<1x16x384xbf16, #tpu.memory_space<vmem>>, vector<1x16x256xbf16>
    %8 = vector.shape_cast %7 : vector<1x16x256xbf16> to vector<16x256xbf16>
    %c0_8 = arith.constant 0 : index
    %c0_9 = arith.constant 0 : index
    %c17 = arith.constant 17 : index
    %9 = vector.load %arg2[%c0_8, %c0_9, %c17] : memref<1x16x384xbf16, #tpu.memory_space<vmem>>, vector<1x16x256xbf16>
    %10 = vector.shape_cast %9 : vector<1x16x256xbf16> to vector<16x256xbf16>
    %11 = vector.broadcast %0 : vector<1x256xbf16> to vector<16x256xbf16>
    %12 = arith.mulf %10, %11 : vector<16x256xbf16>
    %c0_10 = arith.constant 0 : index
    %c0_11 = arith.constant 0 : index
    %c0_12 = arith.constant 0 : index
    %13 = vector.load %arg3[%c0_10, %c0_11, %c0_12] : memref<1x144x16xbf16, #tpu.memory_space<vmem>>, vector<1x64x16xbf16>
    %14 = vector.shape_cast %13 : vector<1x64x16xbf16> to vector<64x16xbf16>
    %cst = arith.constant dense<0.000000e+00> : vector<64x256xf32>
    %15 = tpu.matmul %14, %2, %cst {dimension_numbers = #tpu.dot_dimension_numbers<[1], [0], [0], [1], [0, 0, 1, 1], [], []>} : vector<64x16xbf16>, vector<16x256xbf16>, vector<64x256xf32> -> vector<64x256xf32>
    %c0_13 = arith.constant 0 : index
    %c64 = arith.constant 64 : index
    %c0_14 = arith.constant 0 : index
    %16 = vector.load %arg3[%c0_13, %c64, %c0_14] : memref<1x144x16xbf16, #tpu.memory_space<vmem>>, vector<1x32x16xbf16>
    %17 = vector.shape_cast %16 : vector<1x32x16xbf16> to vector<32x16xbf16>
    %cst_15 = arith.constant dense<0.000000e+00> : vector<32x256xf32>
    %18 = tpu.matmul %17, %6, %cst_15 {dimension_numbers = #tpu.dot_dimension_numbers<[1], [0], [0], [1], [0, 0, 1, 1], [], []>} : vector<32x16xbf16>, vector<16x256xbf16>, vector<32x256xf32> -> vector<32x256xf32>
    %c0_16 = arith.constant 0 : index
    %c96 = arith.constant 96 : index
    %c0_17 = arith.constant 0 : index
    %19 = vector.load %arg3[%c0_16, %c96, %c0_17] : memref<1x144x16xbf16, #tpu.memory_space<vmem>>, vector<1x32x16xbf16>
    %20 = vector.shape_cast %19 : vector<1x32x16xbf16> to vector<32x16xbf16>
    %cst_18 = arith.constant dense<0.000000e+00> : vector<32x256xf32>
    %21 = tpu.matmul %20, %8, %cst_18 {dimension_numbers = #tpu.dot_dimension_numbers<[1], [0], [0], [1], [0, 0, 1, 1], [], []>} : vector<32x16xbf16>, vector<16x256xbf16>, vector<32x256xf32> -> vector<32x256xf32>
    %c0_19 = arith.constant 0 : index
    %c128 = arith.constant 128 : index
    %c0_20 = arith.constant 0 : index
    %22 = vector.load %arg3[%c0_19, %c128, %c0_20] : memref<1x144x16xbf16, #tpu.memory_space<vmem>>, vector<1x16x16xbf16>
    %23 = vector.shape_cast %22 : vector<1x16x16xbf16> to vector<16x16xbf16>
    %cst_21 = arith.constant dense<0.000000e+00> : vector<16x256xf32>
    %24 = tpu.matmul %23, %12, %cst_21 {dimension_numbers = #tpu.dot_dimension_numbers<[1], [0], [0], [1], [0, 0, 1, 1], [], []>} : vector<16x16xbf16>, vector<16x256xbf16>, vector<16x256xf32> -> vector<16x256xf32>
    %25 = vector.extract_strided_slice %15 {offsets = [0, 0], sizes = [16, 256], strides = [1, 1]} : vector<64x256xf32> to vector<16x256xf32>
    %26 = vector.extract_strided_slice %15 {offsets = [16, 0], sizes = [16, 256], strides = [1, 1]} : vector<64x256xf32> to vector<16x256xf32>
    %27 = vector.extract_strided_slice %18 {offsets = [0, 0], sizes = [16, 256], strides = [1, 1]} : vector<32x256xf32> to vector<16x256xf32>
    %28 = arith.addf %26, %27 : vector<16x256xf32>
    %29 = vector.extract_strided_slice %15 {offsets = [32, 0], sizes = [16, 256], strides = [1, 1]} : vector<64x256xf32> to vector<16x256xf32>
    %30 = vector.extract_strided_slice %21 {offsets = [0, 0], sizes = [16, 256], strides = [1, 1]} : vector<32x256xf32> to vector<16x256xf32>
    %31 = arith.addf %29, %30 : vector<16x256xf32>
    %32 = vector.extract_strided_slice %15 {offsets = [48, 0], sizes = [16, 256], strides = [1, 1]} : vector<64x256xf32> to vector<16x256xf32>
    %33 = vector.extract_strided_slice %18 {offsets = [16, 0], sizes = [16, 256], strides = [1, 1]} : vector<32x256xf32> to vector<16x256xf32>
    %34 = arith.addf %32, %33 : vector<16x256xf32>
    %35 = vector.extract_strided_slice %21 {offsets = [16, 0], sizes = [16, 256], strides = [1, 1]} : vector<32x256xf32> to vector<16x256xf32>
    %36 = arith.addf %34, %35 : vector<16x256xf32>
    %37 = arith.addf %36, %24 : vector<16x256xf32>
    %38 = tpu.concatenate %25, %28, %31, %37 in 0 : vector<16x256xf32>, vector<16x256xf32>, vector<16x256xf32>, vector<16x256xf32> -> vector<64x256xf32>
    %c0_22 = arith.constant 0 : index
    %c0_23 = arith.constant 0 : index
    %c0_24 = arith.constant 0 : index
    %39 = vector.load %arg4[%c0_22, %c0_23, %c0_24] : memref<1x64x1xf32, #tpu.memory_space<vmem>>, vector<1x64x1xf32>
    %40 = vector.shape_cast %39 : vector<1x64x1xf32> to vector<64x1xf32>
    %41 = vector.broadcast %40 : vector<64x1xf32> to vector<64x256xf32>
    %42 = arith.addf %38, %41 : vector<64x256xf32>
    %cst_25 = arith.constant 0.000000e+00 : f32
    %43 = vector.broadcast %cst_25 : f32 to vector<64x256xf32>
    %44 = arith.cmpf oge, %42, %43 : vector<64x256xf32>
    %cst_26 = arith.constant 0.00999999977 : f32
    %45 = vector.broadcast %cst_26 : f32 to vector<64x256xf32>
    %46 = arith.mulf %45, %42 : vector<64x256xf32>
    %47 = arith.select %44, %42, %46 : vector<64x256xi1>, vector<64x256xf32>
    %cst_27 = arith.constant dense<0.000000e+00> : vector<64xf32>
    %48 = vector.multi_reduction <add>, %47, %cst_27 [1] : vector<64x256xf32> to vector<64xf32>
    %49 = vector.shape_cast %48 : vector<64xf32> to vector<64x1xf32>
    %50 = arith.mulf %47, %47 : vector<64x256xf32>
    %cst_28 = arith.constant dense<0.000000e+00> : vector<64xf32>
    %51 = vector.multi_reduction <add>, %50, %cst_28 [1] : vector<64x256xf32> to vector<64xf32>
    %52 = vector.shape_cast %51 : vector<64xf32> to vector<64x1xf32>
    %53 = vector.extract_strided_slice %49 {offsets = [0, 0], sizes = [16, 1], strides = [1, 1]} : vector<64x1xf32> to vector<16x1xf32>
    %54 = vector.extract_strided_slice %49 {offsets = [16, 0], sizes = [16, 1], strides = [1, 1]} : vector<64x1xf32> to vector<16x1xf32>
    %55 = arith.addf %53, %54 : vector<16x1xf32>
    %56 = vector.extract_strided_slice %49 {offsets = [32, 0], sizes = [16, 1], strides = [1, 1]} : vector<64x1xf32> to vector<16x1xf32>
    %57 = arith.addf %55, %56 : vector<16x1xf32>
    %58 = vector.extract_strided_slice %49 {offsets = [48, 0], sizes = [16, 1], strides = [1, 1]} : vector<64x1xf32> to vector<16x1xf32>
    %59 = arith.addf %57, %58 : vector<16x1xf32>
    %cst_29 = arith.constant 9.765625E-4 : f32
    %60 = vector.broadcast %cst_29 : f32 to vector<16x1xf32>
    %61 = arith.mulf %59, %60 : vector<16x1xf32>
    %62 = vector.extract_strided_slice %52 {offsets = [0, 0], sizes = [16, 1], strides = [1, 1]} : vector<64x1xf32> to vector<16x1xf32>
    %63 = vector.extract_strided_slice %52 {offsets = [16, 0], sizes = [16, 1], strides = [1, 1]} : vector<64x1xf32> to vector<16x1xf32>
    %64 = arith.addf %62, %63 : vector<16x1xf32>
    %65 = vector.extract_strided_slice %52 {offsets = [32, 0], sizes = [16, 1], strides = [1, 1]} : vector<64x1xf32> to vector<16x1xf32>
    %66 = arith.addf %64, %65 : vector<16x1xf32>
    %67 = vector.extract_strided_slice %52 {offsets = [48, 0], sizes = [16, 1], strides = [1, 1]} : vector<64x1xf32> to vector<16x1xf32>
    %68 = arith.addf %66, %67 : vector<16x1xf32>
    %cst_30 = arith.constant 9.765625E-4 : f32
    %69 = vector.broadcast %cst_30 : f32 to vector<16x1xf32>
    %70 = arith.mulf %68, %69 : vector<16x1xf32>
    %71 = arith.mulf %61, %61 : vector<16x1xf32>
    %72 = arith.subf %70, %71 : vector<16x1xf32>
    %cst_31 = arith.constant 0.000000e+00 : f32
    %73 = vector.broadcast %cst_31 : f32 to vector<16x1xf32>
    %74 = arith.maximumf %72, %73 : vector<16x1xf32>
    %cst_32 = arith.constant 9.99999974E-6 : f32
    %75 = vector.broadcast %cst_32 : f32 to vector<16x1xf32>
    %76 = arith.addf %74, %75 : vector<16x1xf32>
    %77 = math.rsqrt %76 : vector<16x1xf32>
    %78 = tpu.concatenate %61, %61, %61, %61 in 0 : vector<16x1xf32>, vector<16x1xf32>, vector<16x1xf32>, vector<16x1xf32> -> vector<64x1xf32>
    %79 = tpu.concatenate %77, %77, %77, %77 in 0 : vector<16x1xf32>, vector<16x1xf32>, vector<16x1xf32>, vector<16x1xf32> -> vector<64x1xf32>
    %80 = vector.broadcast %78 : vector<64x1xf32> to vector<64x256xf32>
    %81 = arith.subf %47, %80 : vector<64x256xf32>
    %82 = vector.broadcast %79 : vector<64x1xf32> to vector<64x256xf32>
    %83 = arith.mulf %81, %82 : vector<64x256xf32>
    %c0_33 = arith.constant 0 : index
    %c0_34 = arith.constant 0 : index
    %c0_35 = arith.constant 0 : index
    %84 = vector.load %arg7[%c0_33, %c0_34, %c0_35] : memref<1x64x256xf32, #tpu.memory_space<vmem>>, vector<1x64x256xf32>
    %85 = vector.shape_cast %84 : vector<1x64x256xf32> to vector<64x256xf32>
    %86 = vector.shape_cast %83 : vector<64x256xf32> to vector<1x64x256xf32>
    tpu.vector_store %arg7[%c0_33, %c0_34, %c0_35], %86 {strides = array<i32>} : memref<1x64x256xf32, #tpu.memory_space<vmem>>, vector<1x64x256xf32>,
    return
  }
  func.func @transform_0(%arg0: i32, %arg1: i32) -> (i32, i32, i32) {
    %c0_i32 = arith.constant 0 : i32
    %c0_i32_0 = arith.constant 0 : i32
    %c0_i32_1 = arith.constant 0 : i32
    return %arg0, %c0_i32, %c0_i32_0 : i32, i32, i32
  }
  func.func @transform_1(%arg0: i32, %arg1: i32) -> (i32, i32, i32) {
    %c0_i32 = arith.constant 0 : i32
    %c0_i32_0 = arith.constant 0 : i32
    %c0_i32_1 = arith.constant 0 : i32
    return %arg1, %c0_i32, %c0_i32_0 : i32, i32, i32
  }
  func.func @transform_2(%arg0: i32, %arg1: i32) -> (i32, i32, i32) {
    %c0_i32 = arith.constant 0 : i32
    %c0_i32_0 = arith.constant 0 : i32
    %c0_i32_1 = arith.constant 0 : i32
    return %arg1, %c0_i32, %c0_i32_0 : i32, i32, i32
  }
  func.func @transform_3(%arg0: i32, %arg1: i32) -> (i32, i32) {
    %c0_i32 = arith.constant 0 : i32
    %c0_i32_0 = arith.constant 0 : i32
    %c0_i32_1 = arith.constant 0 : i32
    return %c0_i32, %c0_i32_0 : i32, i32
  }
  func.func @transform_4(%arg0: i32, %arg1: i32) -> (i32, i32) {
    %c0_i32 = arith.constant 0 : i32
    %c0_i32_0 = arith.constant 0 : i32
    %c0_i32_1 = arith.constant 0 : i32
    return %c0_i32, %c0_i32_0 : i32, i32
  }
  func.func @transform_5(%arg0: i32, %arg1: i32) -> (i32, i32, i32) {
    %c0_i32 = arith.constant 0 : i32
    %c0_i32_0 = arith.constant 0 : i32
    return %arg0, %arg1, %c0_i32 : i32, i32, i32
  }
}

</mosaic_0001>

<bundles_post_ra>
// kernel: tpu_custom_call.1
= control target key start
LH: loop header
LB: loop body
LE: loop exit
PB: predicated region body
PF: predicated region fallthrough
CT: control target
= control target key end

     0   :  { %10 = vsyncpa [#allocation3], 0  ;;  %s1715_s0 = inlined_call_operand.vmem [shape: bf16[2,16,384], index: 0, kind: input, shape index: {}]   ;;  %s1716_s1 = inlined_call_operand.vmem [shape: bf16[1,144,16], index: 1, kind: input, shape index: {}]   ;;  %s1717_s2 = inlined_call_operand.vmem [shape: f32[1,64,1], index: 2, kind: input, shape index: {}]   ;;  %s1718_s3 = inlined_call_operand.vmem [shape: bf16[1,256], index: 3, kind: input, shape index: {}]   ;;  %s1719_s4 = inlined_call_operand.vmem [shape: bf16[1,256], index: 4, kind: input, shape index: {}]   ;;  %s1720_s5 = inlined_call_operand.hbm [shape: f32[2,64,256], index: 5, kind: output, shape index: {}]  }
   0x1   :  { %12 = vsyncpa [#allocation3 + $0x1], 0  ;;  %s1402_s18 = smov 0   ;;  %s1404_s19 = smov 0  }
   0x2   :  { %s1406_s20 = smov 0   ;;  %s1408_s21 = smov 0  }
   0x3   :  { %s1410_s22 = smov 0   ;;  %s1412_s23 = smov 0  }
   0x4 LB: > { %s1155_s4 = sadd.s32 4294967295, %s1360_s23   ;;  %s1156_s24 = sadd.s32 4294967294, %s1360_s23   ;;  %s1360_s23 = sphi %s1412_s23, %s18_s23   ;;  %s1356_s22 = sphi %s1410_s22, %s1727_s22   ;;  %s1352_s21 = sphi %s1408_s21, %s1726_s21   ;;  %s1348_s20 = sphi %s1406_s20, %s1725_s20   ;;  %s1344_s19 = sphi %s1404_s19, %s1724_s19   ;;  %s1340_s18 = sphi %s1402_s18, %s1723_s18  }
   0x5   : > { %s30_s25 = sadd.s32 1, %s1356_s22  ;;  %s159_s26 = sadd.s32 1, %s1348_s20 }
   0x6   : > { %p32_p0 = scmp.ge.s32.totalorder %s30_s25, 2  ;;  %p169_p1 = scmp.ne.s32.totalorder %s1348_s20, %s1344_s19 }
   0x7   : > { %p170_p2 = scmp.eq.s32.totalorder %s1155_s4, 1  ;;  %p175_p3 = scmp.ne.s32.totalorder %s1344_s19, %s1340_s18 }
   0x8   : > { %s1729_s25 = smov (%p32_p0, %s30_s25), 0  ;;  %p176_p5 = scmp.eq.s32.totalorder %s1156_s24, 1 }
   0x9   : > { %p1442_p4 = por %p170_p2, %p169_p1  ;;  %s154_s28 = ssub.s32 %s1356_s22, %s1729_s25 }
   0xa   : > { %p1161_p6 = scmp.ge.s32.totalorder %s1360_s23, 1  ;;  %p157_p7 = scmp.eq.s32.totalorder %s154_s28, 0 }
   0xb   : > { %p1449_p8 = por %p176_p5, %p175_p3  ;;  %p224_p9 = scmp.lt.s32.totalorder %s1360_s23, 3 }
   0xc   : > { %s1455_s30 = scalar_select %p157_p7, %s1348_s20, %s159_s26  }
   0xd   : > { %p225_p10 = pnand %p1161_p6, %p224_p9 }
   0xe   : > { %p262_p11 = scmp.lt.s32.totalorder (!%p225_p10), %s1352_s21, 1  ;;  %s1363_s13 = smov (!%p225_p10), 1  }
   0xf   : > { %228 = sbr.rel (%p225_p10) target bundleno = 824 (0x338), region = 40  ;;  %s1364_s14 = smov (!%p225_p10), 17  }
  0x10   : > { %s1366_s28 = smov (!%p225_p10), 127   ;;  %s259_s26 = sand.u32 (!%p225_p10), 1, %s1344_s19  }
  0x11   : > { %s1200_s6 = sshll.u32 (!%p225_p10), %s1352_s21, 11  ;;  %s1670_s11 = scalar_lea.sflag (!%p225_p10), [#allocation3], %s259_s26 }
  0x12   : > { %s1656_s10 = scalar_lea.hbm (!%p225_p10), %s1720_s5, %s1200_s6 }
  0x14   : > { %v1164_v0 = vld.sshfl [vmem:[%s1718_s3] sm:$0x11 pattern:$0x75316420]  ;;  %v298_v1 = vlaneseq  ;;  %v1362_v2 = vmov 1966171168  }
  0x15   : > { %v296_v3 = vunpack.c.l.s4 %v1362_v2  ;;  %v294_v5 = vcombine.high %v1164_v0, %v1164_v0  ;;  %s263_s8 = scalar_select %p262_p11, %s1352_s21, 1  ;;  %v1271_v20 = vld [vmem:[%s1716_s1] sm:$0xff]   ;;  %v1365_v21 = vmov 0   ;;  %vm388_vm0 = vcmask 130048   ;;  %v1272_v22 = vld [vmem:[%s1716_s1 + $0x8] sm:$0xff]   ;;  %v1275_v25 = vld [vmem:[%s1716_s1 + $0x10] sm:$0xff]  }
  0x16   : > { %v299_v4 = vshrl.u32 %v298_v1, 7  ;;  %433 = vmatprep.mubr.bf16.mxu0 %v1365_v21  ;;  %550 = vmatprep.mubr.bf16.mxu1 %v1365_v21  ;;  %vm331_vm1 = vcmask 7168   ;;  %vm342_vm2 = vcmask 138240   ;;  %v1277_v42 = vld [vmem:[%s1716_s1 + $0x18] sm:$0xff]   ;;  %v765_v48 = vld [vmem:[%s1717_s2] sm:$0xff]  ;;  %v766_v49 = vld [vmem:[%s1717_s2 + $0x8] sm:$0xff] }
  0x17   : > { %v297_v6 = vunpack.c.0.s8 %v296_v3  ;;  %s1201_s9 = smul.u32 24, %s263_s8  ;;  %1266 = vset.pattern.permute.xlu1 %v1365_v21  ;;  %1267 = vset.pattern.permute.xlu0 %v1365_v21  ;;  %s1367_s8 = smov 112   ;;  %v767_v50 = vld [vmem:[%s1717_s2 + $0x10] sm:$0xff]  ;;  %v769_v51 = vld [vmem:[%s1717_s2 + $0x20] sm:$0xff]  ;;  %v768_v52 = vld [vmem:[%s1717_s2 + $0x18] sm:$0xff]  ;;  %vm507_vm3 = vcmask 1039360  }
  0x18   : > { %v314_v8 = vsub.s32 0, %v299_v4  ;;  %v771_v53 = vld [vmem:[%s1717_s2 + $0x30] sm:$0xff]  ;;  %v770_v54 = vld [vmem:[%s1717_s2 + $0x28] sm:$0xff]  ;;  %v772_v55 = vld [vmem:[%s1717_s2 + $0x38] sm:$0xff]  ;;  %vm604_vm4 = vcmask 916480   ;;  %vm694_vm5 = vcmask 908288  }
  0x19   : > { %v300_v7 = vsub.s32 %v297_v6, %v299_v4  ;;  %s1465_s12 = scalar_lea.vmem %s1715_s0, %s1201_s9  ;;  %s1368_s9 = smov 111   ;;  %v1273_v62 = vld [vmem:[%s1716_s1 + $0x20] sm:$0xff]  }
  0x1a   : > { %v282_v15 = vld [vmem:[%s1465_s12] sm:$0xff]  ;;  %v284_v16 = vld [vmem:[%s1465_s12 + $0xc] sm:$0xff]  ;;  %v283_v27 = vld [vmem:[%s1465_s12 + $0x8] sm:$0xf] }
  0x1b   : > { %v301_v9 = vrot.slane %v1164_v0, %v300_v7  ;;  %v308_v10 = vrot.slane %v294_v5, %v300_v7  ;;  %v1186_v18 = vcombine.high %v282_v15, %v284_v16  ;;  %v1185_v19 = vcombine.low %v282_v15, %v284_v16  ;;  %v285_v28 = vld [vmem:[%s1465_s12 + $0x14] sm:$0xf]  ;;  %v1274_v5 = vld [vmem:[%s1716_s1 + $0x28] sm:$0xff]  }
  0x1c   : > { %v1187_v40 = vcombine.low %v283_v27, %v285_v28 }
  0x1d   : > { %v310_v11 = vpack.i.b16 %v301_v9, %v301_v9  ;;  %v317_v12 = vpack.i.b16 %v308_v10, %v308_v10  ;;  %415 = vmatprep.subr.bf16.mxu0 %v1186_v18  ;;  %v1279_v9 = vld [vmem:[%s1716_s1 + $0x40] sm:$0xff]   ;;  %v1276_v10 = vld [vmem:[%s1716_s1 + $0x30] sm:$0xff]  }
  0x1e   : > { %416 = vmatpush1.bf16.msra.mxu0 %v1185_v19 }
  0x1f   : > { %v315_v13 = vrot.slane %v310_v11, %v314_v8  ;;  %v322_v14 = vrot.slane %v317_v12, %v314_v8  ;;  %v1278_v11 = vld [vmem:[%s1716_s1 + $0x38] sm:$0xff]  }
  0x21   : > { %v1165_v17 = vcombine.low %v315_v13, %v322_v14  ;;  %1172 = vmatmul.mubr.msk.bf16.vlgmr.msra.gmra.mxu0 %vm388_vm0, %v1271_v20 }
  0x22   : > { %443 = vmatprep.mubr.bf16.mxu0 %v1365_v21 }
  0x23   : > { %328 = vrot.lane.b32.xlu0 %v1165_v17, %s1363_s13  ;;  %s1369_s13 = smov [#allocation2]  }
  0x27   : > { %339 = vrot.lane.b32.xlu0 %v1165_v17, %s1364_s14  ;;  %s1288_s14 = sshll.u32 %s1369_s13, 4  ;;  %s1289_s14 = int_to_ptr.vmem [resolvable:$false] %s1288_s14 }
  0x28   : > { %s1290_s15 = scalar_lea.vmem %s1289_s14, 4096 }
  0x29   : > { %1173 = vmatmul.mubr.msk.bf16.gmra.mxu0 %vm388_vm0, %v1272_v22 }
  0x2a   : > { %453 = vmatprep.mubr.bf16.mxu0 %v1365_v21 }
  0x31   : > { %1174 = vmatmul.mubr.msk.bf16.gmra.mxu0 %vm388_vm0, %v1275_v25 }
  0x32   : > { %463 = vmatprep.mubr.bf16.mxu0 %v1365_v21 }
  0x39   : > { %1175 = vmatmul.mubr.msk.bf16.gmra.mxu0 %vm388_vm0, %v1277_v42 }
  0x3a   : > { %734 = vmatprep.mubr.bf16.mxu0 %v1365_v21 }
  0x95   : > { %v329_v23 = vpop.permute.xlu0 %328 }
  0x96   : > { %v330_v24 = vrot.slane %v329_v23, 4 }
  0x98   : > { %v332_v26 = vsel %vm331_vm1, %v330_v24, %v329_v23  ;;  %v336_v35 = vmul.bf16 %v330_v24, %v283_v27  ;;  %v338_v36 = vmul.bf16 %v330_v24, %v285_v28 }
  0x99   : > { %v335_v29 = vmul.bf16 %v332_v26, %v282_v15  ;;  %v337_v30 = vmul.bf16 %v332_v26, %v284_v16  ;;  %v340_v31 = vpop.permute.xlu0 %339 }
  0x9a   : > { %v341_v32 = vrot.slane %v340_v31, 4  ;;  %v1180_v41 = vcombine.low %v336_v35, %v338_v36 }
  0x9b   : > { %v1179_v33 = vcombine.high %v335_v29, %v337_v30  ;;  %v1178_v34 = vcombine.low %v335_v29, %v337_v30 }
  0x9c   : > { %v343_v37 = vsel %vm342_vm2, %v341_v32, %v340_v31  ;;  %v347_v45 = vmul.bf16 %v341_v32, %v283_v27  ;;  %v349_v46 = vmul.bf16 %v341_v32, %v285_v28 }
  0x9d   : > { %v346_v38 = vmul.bf16 %v343_v37, %v282_v15  ;;  %v348_v39 = vmul.bf16 %v343_v37, %v284_v16  ;;  %503 = vrot.lane.b32.xlu1 %v1179_v33, %s1366_s28  ;;  %501 = vrot.lane.b32.xlu0 %v1178_v34, %s1366_s28 }
  0x9e   : > { %v1193_v47 = vcombine.low %v347_v45, %v349_v46 }
  0x9f   : > { %v1192_v43 = vcombine.high %v346_v38, %v348_v39  ;;  %v1191_v44 = vcombine.low %v346_v38, %v348_v39 }
  0xa1   : > { %505 = vrot.lane.b32.xlu1 %v1180_v41, %s1366_s28  ;;  %602 = vrot.lane.b32.xlu0 %v1187_v40, %s1367_s8  ;;  %s1162_s28 = sshll.u32 %s259_s26, 7 }
  0xa2   : > { %s1634_s7 = scalar_lea.vmem [#allocation2], %s1162_s28 }
  0xa5   : > { %600 = vrot.lane.b32.xlu1 %v1186_v18, %s1367_s8  ;;  %690 = vrot.lane.b32.xlu0 %v1192_v43, %s1368_s9 }
  0xa9   : > { %598 = vrot.lane.b32.xlu1 %v1185_v19, %s1367_s8  ;;  %688 = vrot.lane.b32.xlu0 %v1191_v44, %s1368_s9  ;;  %s1052_s8 = sshll.u32 %s1634_s7, 4  ;;  %s1658_s8 = int_to_ptr.vmem [resolvable:$true] %s1052_s8 }
  0xaa   : > { %s1284_s12 = scalar_lea.vmem %s1658_s8, 2048  ;;  %p1291_p1 = scmp.lt.s32.totalorder %s1658_s8, %s1289_s14 }
  0xab   : > { %p1285_p12 = scmp.ne.s32.totalorder %s1658_s8, %s1284_s12  ;;  %p1292_p2 = scmp.lt.s32.totalorder %s1290_s15, %s1284_s12 }
  0xad   : > { %692 = vrot.lane.b32.xlu1 %v1193_v47, %s1368_s9  ;;  %780 = vperm.xlu0 %1267, %v766_v49   ;;  %p1286_p13 = pnand %p1285_p12, %p1442_p4  ;;  %p1293_p3 = por %p1292_p2, %p1291_p1 }
  0xaf   : > { %p1287_p0 = pneg %p1286_p13 }
  0xb1   : > { %775 = vperm.xlu1 %1266, %v765_v48   ;;  %795 = vperm.xlu0 %1267, %v769_v51   ;;  %p1294_p5 = pnand %p1293_p3, %p1287_p0 }
  0xb5   : > { %785 = vperm.xlu1 %1266, %v767_v50   ;;  %805 = vperm.xlu0 %1267, %v771_v53  }
  0xb9   : > { %790 = vperm.xlu1 %1266, %v768_v52  }
  0xbd   : > { %800 = vperm.xlu1 %1266, %v770_v54  }
  0xc1   : > { %810 = vperm.xlu1 %1266, %v772_v55  }
  0xe1   : > { %v435_v13 = vpop.f32.mrf.mxu0 }
  0xe3   : > { %v437_v15 = vpop.f32.mrf.mxu0 }
  0xe5   : > { %v439_v19 = vpop.f32.mrf.mxu0 }
  0xe7   : > { %v441_v23 = vpop.f32.mrf.mxu0 }
  0xe9   : > { %v445_v38 = vpop.f32.mrf.mxu0 }
  0xeb   : > { %v447_v39 = vpop.f32.mrf.mxu0 }
  0xed   : > { %v449_v40 = vpop.f32.mrf.mxu0 }
  0xef   : > { %v451_v41 = vpop.f32.mrf.mxu0 }
  0xf1   : > { %v455_v42 = vpop.f32.mrf.mxu0 }
  0xf3   : > { %v457_v43 = vpop.f32.mrf.mxu0 }
  0xf5   : > { %v459_v44 = vpop.f32.mrf.mxu0 }
  0xf7   : > { %v461_v49 = vpop.f32.mrf.mxu0 }
 0x10f   : > { %v504_v56 = vpop.permute.xlu1 %503  ;;  %v502_v57 = vpop.permute.xlu0 %501 }
 0x110   : > { %v508_v61 = vsel %vm507_vm3, %v502_v57, %v504_v56 }
 0x113   : > { %v506_v58 = vpop.permute.xlu1 %505  ;;  %v603_v59 = vpop.permute.xlu0 %602 }
 0x114   : > { %v509_v60 = vsel %vm507_vm3, %v504_v56, %v506_v58  ;;  %v465_v58 = vpop.f32.mrf.mxu0 }
 0x115   : > { %532 = vmatprep.subr.bf16.mxu1 %v509_v60 }
 0x116   : > { %533 = vmatpush1.bf16.msra.mxu1 %v508_v61 }
 0x117   : > { %v601_v63 = vpop.permute.xlu1 %600  ;;  %v691_v0 = vpop.permute.xlu0 %690 }
 0x118   : > { %v606_v1 = vsel %vm604_vm4, %v601_v63, %v603_v59 }
 0x119   : > { %1181 = vmatmul.mubr.msk.bf16.vlgmr.msra.gmra.mxu1 %vm388_vm0, %v1273_v62  ;;  %629 = vmatprep.subr.bf16.mxu1 %v606_v1 }
 0x11a   : > { %560 = vmatprep.mubr.bf16.mxu1 %v1365_v21 }
 0x11b   : > { %v599_v2 = vpop.permute.xlu1 %598  ;;  %v689_v4 = vpop.permute.xlu0 %688 }
 0x11c   : > { %v605_v3 = vsel %vm604_vm4, %v599_v2, %v601_v63  ;;  %v695_v6 = vsel %vm694_vm5, %v689_v4, %v691_v0 }
 0x11d   : > { %630 = vmatpush1.bf16.msra.mxu1 %v605_v3 }
 0x11f   : > { %v693_v7 = vpop.permute.xlu1 %692 }
 0x120   : > { %v696_v8 = vsel %vm694_vm5, %v691_v0, %v693_v7  ;;  %v467_v7 = vpop.f32.mrf.mxu0 }
 0x121   : > { %1182 = vmatmul.mubr.msk.bf16.gmra.mxu1 %vm388_vm0, %v1274_v5  ;;  %716 = vmatprep.subr.bf16.mxu0 %v696_v8 }
 0x122   : > { %717 = vmatpush1.bf16.msra.mxu0 %v695_v6  ;;  %647 = vmatprep.mubr.bf16.mxu1 %v1365_v21 }
 0x125   : > { %1194 = vmatmul.mubr.msk.bf16.vlgmr.msra.gmra.mxu0 %vm388_vm0, %v1279_v9 }
 0x128   : > { %v781_v16 = vpop.permute.xlu0 %780 }
 0x129   : > { %1188 = vmatmul.mubr.msk.bf16.vlgmr.msra.gmra.mxu1 %vm388_vm0, %v1276_v10  ;;  %v815_v22 = vadd.f32 %v781_v16, %v439_v19 }
 0x12a   : > { %657 = vmatprep.mubr.bf16.mxu1 %v1365_v21  ;;  %v816_v21 = vadd.f32 %v781_v16, %v441_v23  ;;  %v469_v16 = vpop.f32.mrf.mxu0 }
 0x12b   : > { %v847_v27 = vmul.f32 0.01, %v815_v22  ;;  %vm831_vm9 = vcmp.ge.f32.partialorder %v815_v22, 0.0 }
 0x12c   : > { %v776_v12 = vpop.permute.xlu1 %775  ;;  %vm832_vm8 = vcmp.ge.f32.partialorder %v816_v21, 0.0  ;;  %v848_v28 = vmul.f32 0.01, %v816_v21 }
 0x12d   : > { %v813_v14 = vadd.f32 %v776_v12, %v435_v13  ;;  %v814_v17 = vadd.f32 %v776_v12, %v437_v15  ;;  %v1554_v33 = vsel %vm831_vm9, %v815_v22, %v847_v27 }
 0x12e   : > { %v1550_v30 = vsel %vm832_vm8, %v816_v21, %v848_v28  ;;  %v903_v34 = vmul.f32 %v1554_v33, %v1554_v33  ;;  %v471_v21 = vpop.f32.mrf.mxu0 }
 0x12f   : > { %v845_v18 = vmul.f32 0.01, %v813_v14  ;;  %v846_v20 = vmul.f32 0.01, %v814_v17  ;;  %vm829_vm6 = vcmp.ge.f32.partialorder %v813_v14, 0.0  ;;  %vm830_vm7 = vcmp.ge.f32.partialorder %v814_v17, 0.0 }
 0x130   : > { %v904_v35 = vmul.f32 %v1550_v30, %v1550_v30  ;;  %v880_v36 = vadd.f32 %v1550_v30, %v1554_v33  ;;  %v786_v45 = vpop.permute.xlu1 %785 }
 0x131   : > { %1189 = vmatmul.mubr.msk.bf16.gmra.mxu1 %vm388_vm0, %v1278_v11  ;;  %v1542_v24 = vsel %vm829_vm6, %v813_v14, %v845_v18  ;;  %v1544_v25 = vsel %vm830_vm7, %v814_v17, %v846_v20  ;;  %v796_v20 = vpop.permute.xlu0 %795 }
 0x132   : > { %v901_v26 = vmul.f32 %v1542_v24, %v1542_v24  ;;  %v902_v29 = vmul.f32 %v1544_v25, %v1544_v25  ;;  %v877_v32 = vadd.f32 %v1544_v25, %v1542_v24  ;;  %v920_v37 = vadd.f32 %v904_v35, %v903_v34 }
 0x134   : > { %v917_v31 = vadd.f32 %v902_v29, %v901_v26  ;;  %878 = vadd.xlane.f32.xlu0 %v877_v32  ;;  %v791_v56 = vpop.permute.xlu1 %790 }
 0x136   : > { %918 = vadd.xlane.f32.xlu1 %v917_v31 }
 0x138   : > { %921 = vadd.xlane.f32.xlu0 %v920_v37  ;;  %v801_v35 = vpop.permute.xlu1 %800 }
 0x13a   : > { %881 = vadd.xlane.f32.xlu1 %v880_v36 }
 0x1d9   : > { %v552_v46 = vpop.f32.mrf.mxu1 }
 0x1da   : > { %v745_v47 = vadd.f32 %v552_v46, %v445_v38 }
 0x1db   : > { %v554_v48 = vpop.f32.mrf.mxu1 }
 0x1dc   : > { %v746_v50 = vadd.f32 %v554_v48, %v447_v39  ;;  %v817_v51 = vadd.f32 %v786_v45, %v745_v47 }
 0x1dd   : > { %v556_v52 = vpop.f32.mrf.mxu1 }
 0x1de   : > { %v818_v53 = vadd.f32 %v786_v45, %v746_v50  ;;  %v849_v54 = vmul.f32 0.01, %v817_v51  ;;  %v747_v55 = vadd.f32 %v556_v52, %v449_v40  ;;  %vm833_vm10 = vcmp.ge.f32.partialorder %v817_v51, 0.0 }
 0x1df   : > { %v558_v57 = vpop.f32.mrf.mxu1 }
 0x1e0   : > { %v850_v59 = vmul.f32 0.01, %v818_v53  ;;  %v748_v60 = vadd.f32 %v558_v57, %v451_v41  ;;  %v819_v61 = vadd.f32 %v791_v56, %v747_v55  ;;  %vm834_vm11 = vcmp.ge.f32.partialorder %v818_v53, 0.0 }
 0x1e1   : > { %v562_v62 = vpop.f32.mrf.mxu1  ;;  %v1562_v63 = vsel %vm833_vm10, %v817_v51, %v849_v54  ;;  %v806_v54 = vpop.permute.xlu0 %805 }
 0x1e2   : > { %v820_v0 = vadd.f32 %v791_v56, %v748_v60  ;;  %v851_v1 = vmul.f32 0.01, %v819_v61  ;;  %v1564_v2 = vsel %vm834_vm11, %v818_v53, %v850_v59  ;;  %vm835_vm12 = vcmp.ge.f32.partialorder %v819_v61, 0.0 }
 0x1e3   : > { %v564_v3 = vpop.f32.mrf.mxu1  ;;  %v883_v4 = vadd.f32 %v1564_v2, %v1562_v63  ;;  %v905_v5 = vmul.f32 %v1562_v63, %v1562_v63  ;;  %v906_v6 = vmul.f32 %v1564_v2, %v1564_v2  ;;  %v753_v36 = vadd.f32 %v562_v62, %v465_v58 }
 0x1e4   : > { %v852_v8 = vmul.f32 0.01, %v820_v0  ;;  %vm836_vm13 = vcmp.ge.f32.partialorder %v820_v0, 0.0  ;;  %v1572_v11 = vsel %vm835_vm12, %v819_v61, %v851_v1  ;;  %v754_v41 = vadd.f32 %v564_v3, %v467_v7 }
 0x1e5   : > { %v566_v9 = vpop.f32.mrf.mxu1  ;;  %884 = vadd.xlane.f32.xlu0 %v883_v4  ;;  %v923_v10 = vadd.f32 %v906_v6, %v905_v5  ;;  %v907_v18 = vmul.f32 %v1572_v11, %v1572_v11  ;;  %v736_v29 = vpop.f32.mrf.mxu0 }
 0x1e6   : > { %v1574_v12 = vsel %vm836_vm13, %v820_v0, %v852_v8  ;;  %v755_v51 = vadd.f32 %v566_v9, %v469_v16 }
 0x1e7   : > { %v568_v13 = vpop.f32.mrf.mxu1  ;;  %v886_v14 = vadd.f32 %v1574_v12, %v1572_v11  ;;  %924 = vadd.xlane.f32.xlu1 %v923_v10  ;;  %v908_v15 = vmul.f32 %v1574_v12, %v1574_v12 }
 0x1e8   : > { %v756_v57 = vadd.f32 %v568_v13, %v471_v21 }
 0x1e9   : > { %v649_v17 = vpop.f32.mrf.mxu1  ;;  %887 = vadd.xlane.f32.xlu0 %v886_v14  ;;  %v926_v23 = vadd.f32 %v908_v15, %v907_v18  ;;  %v811_v14 = vpop.permute.xlu1 %810 }
 0x1ea   : > { %v749_v19 = vadd.f32 %v649_v17, %v455_v42 }
 0x1eb   : > { %v651_v22 = vpop.f32.mrf.mxu1 }
 0x1ec   : > { %v750_v26 = vadd.f32 %v651_v22, %v457_v43  ;;  %v821_v27 = vadd.f32 %v796_v20, %v749_v19  ;;  %v738_v43 = vpop.f32.mrf.mxu0 }
 0x1ed   : > { %v653_v28 = vpop.f32.mrf.mxu1  ;;  %927 = vadd.xlane.f32.xlu0 %v926_v23 }
 0x1ee   : > { %v822_v31 = vadd.f32 %v796_v20, %v750_v26  ;;  %v853_v32 = vmul.f32 0.01, %v821_v27  ;;  %v751_v34 = vadd.f32 %v653_v28, %v459_v44  ;;  %vm837_vm14 = vcmp.ge.f32.partialorder %v821_v27, 0.0  ;;  %v740_v59 = vpop.f32.mrf.mxu0 }
 0x1ef   : > { %v655_v37 = vpop.f32.mrf.mxu1 }
 0x1f0   : > { %v854_v38 = vmul.f32 0.01, %v822_v31  ;;  %v823_v39 = vadd.f32 %v801_v35, %v751_v34  ;;  %v752_v40 = vadd.f32 %v655_v37, %v461_v49  ;;  %vm838_vm15 = vcmp.ge.f32.partialorder %v822_v31, 0.0  ;;  %v742_v15 = vpop.f32.mrf.mxu0 }
 0x1f1   : > { %v659_v42 = vpop.f32.mrf.mxu1  ;;  %v1582_v45 = vsel %vm837_vm14, %v821_v27, %v853_v32 }
 0x1f2   : > { %v855_v46 = vmul.f32 0.01, %v823_v39  ;;  %v824_v47 = vadd.f32 %v801_v35, %v752_v40  ;;  %v757_v48 = vadd.f32 %v753_v36, %v659_v42  ;;  %v1584_v50 = vsel %vm838_vm15, %v822_v31, %v854_v38  ;;  %v879_v40 = vpop.xlane.xlu0 %878  ;;  %v919_v42 = vpop.xlane.xlu1 %918 }
 0x1f3   : > { %v661_v44 = vpop.f32.mrf.mxu1  ;;  %v889_v52 = vadd.f32 %v1584_v50, %v1582_v45  ;;  %v910_v53 = vmul.f32 %v1584_v50, %v1584_v50  ;;  %vm839_vm0 = vcmp.ge.f32.partialorder %v823_v39, 0.0  ;;  %v909_v60 = vmul.f32 %v1582_v45, %v1582_v45 }
 0x1f4   : > { %v856_v49 = vmul.f32 0.01, %v824_v47  ;;  %v758_v55 = vadd.f32 %v754_v41, %v661_v44  ;;  %v761_v56 = vadd.f32 %v757_v48, %v736_v29  ;;  %vm840_vm1 = vcmp.ge.f32.partialorder %v824_v47, 0.0 }
 0x1f5   : > { %v663_v58 = vpop.f32.mrf.mxu1  ;;  %890 = vadd.xlane.f32.xlu1 %v889_v52  ;;  %v1592_v61 = vsel %vm839_vm0, %v823_v39, %v855_v46  ;;  %v929_v5 = vadd.f32 %v910_v53, %v909_v60 }
 0x1f6   : > { %v825_v62 = vadd.f32 %v806_v54, %v761_v56  ;;  %v759_v0 = vadd.f32 %v755_v51, %v663_v58  ;;  %v762_v1 = vadd.f32 %v758_v55, %v738_v43  ;;  %v1594_v3 = vsel %vm840_vm1, %v824_v47, %v856_v49  ;;  %v922_v41 = vpop.xlane.xlu0 %921  ;;  %v882_v46 = vpop.xlane.xlu1 %881 }
 0x1f7   : > { %v665_v4 = vpop.f32.mrf.mxu1  ;;  %v892_v6 = vadd.f32 %v1594_v3, %v1592_v61  ;;  %v912_v7 = vmul.f32 %v1594_v3, %v1594_v3  ;;  %v911_v16 = vmul.f32 %v1592_v61, %v1592_v61 }
 0x1f8   : > { %v857_v8 = vmul.f32 0.01, %v825_v62  ;;  %v826_v9 = vadd.f32 %v806_v54, %v762_v1  ;;  %v760_v10 = vadd.f32 %v756_v57, %v665_v4  ;;  %v763_v13 = vadd.f32 %v759_v0, %v740_v59 }
 0x1f9   : > { %930 = vadd.xlane.f32.xlu1 %v929_v5  ;;  %893 = vadd.xlane.f32.xlu0 %v892_v6  ;;  %vm841_vm2 = vcmp.ge.f32.partialorder %v825_v62, 0.0  ;;  %v932_v20 = vadd.f32 %v912_v7, %v911_v16 }
 0x1fa   : > { %v858_v17 = vmul.f32 0.01, %v826_v9  ;;  %v827_v18 = vadd.f32 %v811_v14, %v763_v13  ;;  %v764_v19 = vadd.f32 %v760_v10, %v742_v15  ;;  %vm842_vm3 = vcmp.ge.f32.partialorder %v826_v9, 0.0 }
 0x1fb   : > { %v1602_v21 = vsel %vm841_vm2, %v825_v62, %v857_v8 }
 0x1fc   : > { %v859_v22 = vmul.f32 0.01, %v827_v18  ;;  %v828_v23 = vadd.f32 %v811_v14, %v764_v19  ;;  %v1604_v26 = vsel %vm842_vm3, %v826_v9, %v858_v17  ;;  %vm843_vm4 = vcmp.ge.f32.partialorder %v827_v18, 0.0 }
 0x1fd   : > { %933 = vadd.xlane.f32.xlu0 %v932_v20  ;;  %v895_v27 = vadd.f32 %v1604_v26, %v1602_v21  ;;  %v914_v28 = vmul.f32 %v1604_v26, %v1604_v26  ;;  %v913_v31 = vmul.f32 %v1602_v21, %v1602_v21 }
 0x1fe   : > { %v860_v29 = vmul.f32 0.01, %v828_v23  ;;  %vm844_vm5 = vcmp.ge.f32.partialorder %v828_v23, 0.0  ;;  %v1612_v32 = vsel %vm843_vm4, %v827_v18, %v859_v22 }
 0x1ff   : > { %896 = vadd.xlane.f32.xlu1 %v895_v27  ;;  %v935_v35 = vadd.f32 %v914_v28, %v913_v31  ;;  %v915_v38 = vmul.f32 %v1612_v32, %v1612_v32 }
 0x200   : > { %v1614_v34 = vsel %vm844_vm5, %v828_v23, %v860_v29 }
 0x201   : > { %v898_v36 = vadd.f32 %v1614_v34, %v1612_v32  ;;  %v916_v37 = vmul.f32 %v1614_v34, %v1614_v34 }
 0x203   : > { %936 = vadd.xlane.f32.xlu1 %v935_v35  ;;  %899 = vadd.xlane.f32.xlu0 %v898_v36  ;;  %v938_v39 = vadd.f32 %v916_v37, %v915_v38 }
 0x207   : > { %939 = vadd.xlane.f32.xlu0 %v938_v39 }
 0x26e   : > { %v885_v43 = vpop.xlane.xlu0 %884 }
 0x26f   : > { %v941_v49 = vadd.f32 %v885_v43, %v879_v40 }
 0x270   : > { %v925_v48 = vpop.xlane.xlu1 %924 }
 0x271   : > { %v949_v58 = vadd.f32 %v925_v48, %v919_v42 }
 0x272   : > { %v888_v47 = vpop.xlane.xlu0 %887 }
 0x273   : > { %v942_v57 = vadd.f32 %v888_v47, %v882_v46 }
 0x276   : > { %v928_v51 = vpop.xlane.xlu0 %927 }
 0x277   : > { %v950_v5 = vadd.f32 %v928_v51, %v922_v41 }
 0x27e   : > { %v891_v44 = vpop.xlane.xlu1 %890 }
 0x27f   : > { %v943_v54 = vadd.f32 %v941_v49, %v891_v44 }
 0x282   : > { %v894_v52 = vpop.xlane.xlu0 %893  ;;  %v931_v53 = vpop.xlane.xlu1 %930 }
 0x283   : > { %v951_v60 = vadd.f32 %v949_v58, %v931_v53  ;;  %v944_v62 = vadd.f32 %v942_v57, %v894_v52 }
 0x286   : > { %v934_v55 = vpop.xlane.xlu0 %933 }
 0x287   : > { %v952_v8 = vadd.f32 %v950_v5, %v934_v55 }
 0x288   : > { %v897_v56 = vpop.xlane.xlu1 %896 }
 0x289   : > { %v945_v59 = vadd.f32 %v943_v54, %v897_v56 }
 0x28b   : > { %v947_v0 = vmul.f32 0.0009765625, %v945_v59 }
 0x28c   : > { %v937_v1 = vpop.xlane.xlu1 %936  ;;  %v900_v4 = vpop.xlane.xlu0 %899 }
 0x28d   : > { %v953_v6 = vadd.f32 %v951_v60, %v937_v1  ;;  %v946_v7 = vadd.f32 %v944_v62, %v900_v4  ;;  %969 = vperm.xlu1 %1266, %v947_v0   ;;  %v957_v9 = vmul.f32 %v947_v0, %v947_v0 }
 0x28f   : > { %v955_v10 = vmul.f32 0.0009765625, %v953_v6  ;;  %v948_v13 = vmul.f32 0.0009765625, %v946_v7 }
 0x290   : > { %v940_v14 = vpop.xlane.xlu0 %939 }
 0x291   : > { %v959_v15 = vsub.f32 %v955_v10, %v957_v9  ;;  %v954_v16 = vadd.f32 %v952_v8, %v940_v14  ;;  %974 = vperm.xlu0 %1267, %v948_v13   ;;  %v958_v18 = vmul.f32 %v948_v13, %v948_v13 }
 0x293   : > { %v961_v17 = vmax.f32 %v959_v15, 0.0  ;;  %v956_v19 = vmul.f32 0.0009765625, %v954_v16 }
 0x295   : > { %v963_v20 = vadd.f32 1e-05, %v961_v17  ;;  %v960_v22 = vsub.f32 %v956_v19, %v958_v18 }
 0x297   : > { %1280 = vrsqrt.f32 %v963_v20  ;;  %v962_v23 = vmax.f32 %v960_v22, 0.0 }
 0x299   : > { %v964_v27 = vadd.f32 1e-05, %v962_v23 }
 0x29b   : > { %1282 = vrsqrt.f32 %v964_v27 }
 0x2a4   : > { %v1281_v28 = vpop.eup %1280 }
 0x2a5   : > { %995 = vperm.xlu1 %1266, %v1281_v28  }
 0x2a8   : > { %v1283_v29 = vpop.eup %1282 }
 0x2a9   : > { %1000 = vperm.xlu1 %1266, %v1283_v29  }
 0x308   : > { %v970_v31 = vpop.permute.xlu1 %969 }
 0x309   : > { %v977_v35 = vsub.f32 %v1542_v24, %v970_v31  ;;  %v978_v36 = vsub.f32 %v1544_v25, %v970_v31  ;;  %v981_v37 = vsub.f32 %v1562_v63, %v970_v31  ;;  %v982_v38 = vsub.f32 %v1564_v2, %v970_v31 }
 0x30a   : > { %v985_v39 = vsub.f32 %v1582_v45, %v970_v31  ;;  %v986_v40 = vsub.f32 %v1584_v50, %v970_v31  ;;  %v989_v41 = vsub.f32 %v1602_v21, %v970_v31  ;;  %v990_v42 = vsub.f32 %v1604_v26, %v970_v31 }
 0x30c   : > { %v975_v43 = vpop.permute.xlu0 %974 }
 0x30d   : > { %v979_v2 = vsub.f32 %v1554_v33, %v975_v43  ;;  %v980_v45 = vsub.f32 %v1550_v30, %v975_v43  ;;  %v983_v50 = vsub.f32 %v1572_v11, %v975_v43  ;;  %v984_v21 = vsub.f32 %v1574_v12, %v975_v43 }
 0x30e   : > { %v987_v26 = vsub.f32 %v1592_v61, %v975_v43  ;;  %v988_v53 = vsub.f32 %v1594_v3, %v975_v43  ;;  %v991_v49 = vsub.f32 %v1612_v32, %v975_v43  ;;  %v992_v54 = vsub.f32 %v1614_v34, %v975_v43 }
 0x320   : > { %v996_v46 = vpop.permute.xlu1 %995 }
 0x321   : > { %v1003_v47 = vmul.f32 %v996_v46, %v977_v35  ;;  %v1004_v48 = vmul.f32 %v996_v46, %v978_v36  ;;  %v1007_v24 = vmul.f32 %v996_v46, %v981_v37  ;;  %v1008_v51 = vmul.f32 %v996_v46, %v982_v38 }
 0x322   : > { %v1011_v25 = vmul.f32 %v996_v46, %v985_v39  ;;  %v1012_v44 = vmul.f32 %v996_v46, %v986_v40  ;;  %v1015_v63 = vmul.f32 %v996_v46, %v989_v41  ;;  %v1016_v52 = vmul.f32 %v996_v46, %v990_v42 }
 0x323   : > { %1019 = vst [vmem:[%s1634_s7] sm:$0xff] %v1003_v47  ;;  %1020 = vst [vmem:[%s1634_s7 + $0x8] sm:$0xff] %v1004_v48 }
 0x324   : > { %1023 = vst [vmem:[%s1634_s7 + $0x20] sm:$0xff] %v1007_v24  ;;  %1024 = vst [vmem:[%s1634_s7 + $0x28] sm:$0xff] %v1008_v51  ;;  %v1001_v30 = vpop.permute.xlu1 %1000 }
 0x325   : > { %1027 = vst [vmem:[%s1634_s7 + $0x40] sm:$0xff] %v1011_v25  ;;  %1028 = vst [vmem:[%s1634_s7 + $0x48] sm:$0xff] %v1012_v44  ;;  %v1005_v33 = vmul.f32 %v1001_v30, %v979_v2  ;;  %v1006_v11 = vmul.f32 %v1001_v30, %v980_v45  ;;  %v1009_v12 = vmul.f32 %v1001_v30, %v983_v50 }
 0x326   : > { %1031 = vst [vmem:[%s1634_s7 + $0x60] sm:$0xff] %v1015_v63  ;;  %1032 = vst [vmem:[%s1634_s7 + $0x68] sm:$0xff] %v1016_v52  ;;  %v1010_v61 = vmul.f32 %v1001_v30, %v984_v21  ;;  %v1013_v3 = vmul.f32 %v1001_v30, %v987_v26  ;;  %v1014_v32 = vmul.f32 %v1001_v30, %v988_v53 }
 0x327   : > { %v1017_v34 = vmul.f32 %v1001_v30, %v991_v49  ;;  %v1018_v55 = vmul.f32 %v1001_v30, %v992_v54  ;;  %1021 = vst [vmem:[%s1634_s7 + $0x10] sm:$0xff] %v1005_v33  ;;  %1022 = vst [vmem:[%s1634_s7 + $0x18] sm:$0xff] %v1006_v11 }
 0x328   : > { %1025 = vst [vmem:[%s1634_s7 + $0x30] sm:$0xff] %v1009_v12  ;;  %1026 = vst [vmem:[%s1634_s7 + $0x38] sm:$0xff] %v1010_v61 }
 0x329   : > { %1029 = vst [vmem:[%s1634_s7 + $0x50] sm:$0xff] %v1013_v3  ;;  %1030 = vst [vmem:[%s1634_s7 + $0x58] sm:$0xff] %v1014_v32 }
 0x32a   : > { %1033 = vst [vmem:[%s1634_s7 + $0x70] sm:$0xff] %v1017_v34  ;;  %1034 = vst [vmem:[%s1634_s7 + $0x78] sm:$0xff] %v1018_v55 }
 0x32b   : > { %1297 = shalt.err (!%p1294_p5)
}
 0x32c   : > { %s1298_s16 = scalar_lea.hbm %s1656_s10, 2048  ;;  %s1302_s24 = scalar_lea.hbm %s1720_s5, 4096 }
 0x32d   : > { %p1299_p6 = scmp.ne.s32.totalorder %s1656_s10, %s1298_s16  ;;  %p1303_p10 = scmp.lt.s32.totalorder %s1656_s10, %s1720_s5 }
 0x32e   : > { %p1304_p11 = scmp.lt.s32.totalorder %s1302_s24, %s1298_s16 }
 0x32f   : > { %p1300_p7 = pnand %p1299_p6, %p1442_p4 }
 0x330   : > { %p1305_p12 = por %p1304_p11, %p1303_p10 }
 0x331   : > { %p1301_p9 = pneg %p1300_p7 }
 0x333   : > { %p1306_p13 = pnand %p1305_p12, %p1301_p9 }
 0x335   : > { %1309 = shalt.err (!%p1306_p13)
}
 0x336   : > { %s1370_s6 = smov 256   ;;  %s1371_s7 = smov 16  }
 0x337   : > { %1202 = dma.vmem_to_hbm [thread:$0]  (%p1442_p4), %s1658_s8, 2048, %s1656_s10, %s1670_s11, %s1370_s6, %s1370_s6, %s1371_s7  }
 0x338 PF: > { %p1208_p0 = scmp.ge.s32.totalorder %s1360_s23, 2  ;;  %s1067_s21 = sand.u32 1, %s1340_s18  }
 0x339   : > { %s1068_s9 = scalar_lea.sflag [#allocation3], %s1067_s21 }
 0x33a   : > { %p1205_p1 = pnand %p1208_p0, %p1449_p8 }
 0x33c   : > { %p1206_p2 = pneg %p1205_p1 }
 0x33e   : > { %1335 = dma.done.wait (%p1206_p2), %s1068_s9, 2048  }
 0x33f   : > { %1337 = vsyncadd (%p1206_p2), %s1068_s9, 4294965248  ;;  %s18_s23 = sadd.s32 1, %s1360_s23   ;;  %s1723_s18 = smov %s1344_s19 }
 0x340   : > { %p15_p3 = scmp.ge.s32.totalorder %s18_s23, 4   ;;  %s1724_s19 = smov %s1348_s20 }
 0x341   : > { %s1725_s20 = smov %s1455_s30  ;;  %s1726_s21 = smov %s1356_s22 }
 0x342   : > { %s1727_s22 = smov %s1729_s25  ;;  %17 = sbr.rel (!%p15_p3) target bundleno = 4 (0x4), region = 81 }
 0x347   :  { %1073 = vsyncpa [#allocation3], 1 }
 0x348   :  { %1075 = vsyncpa [#allocation3 + $0x1], 1 }

</bundles_post_ra>
